<compile_context>
chip_gen: v7x
topology: tpu7x:2x2x1
jax: 0.10.0
libtpu: 0.0.40
codegen_flags: <defaults>
</compile_context>

<pallas_src>
import jax
import jax.numpy as jnp
from jax.experimental import pallas as pl
from jax.experimental.pallas import tpu as pltpu

_SCALES = (1, 2, 4, 8)
_UP = (2, 4, 8)
_K = 7
_P = 3
_LANE = 128


def _round_up(n: int, m: int) -> int:
    return ((n + m - 1) // m) * m


def _bilinear_matrix(n_in: int, scale: int) -> jnp.ndarray:
    """(n_in*scale, n_in) matrix reproducing F.interpolate(mode='bilinear',
    align_corners=False) along one axis (half-pixel centers + edge clamp)."""
    n_out = n_in * scale
    dst = jnp.arange(n_out, dtype=jnp.float32)
    src = jnp.maximum((dst + 0.5) / float(scale) - 0.5, 0.0)
    x0 = jnp.floor(src)
    lam = src - x0
    x0i = jnp.clip(x0.astype(jnp.int32), 0, n_in - 1)
    x1i = jnp.minimum(x0i + 1, n_in - 1)
    return ((1.0 - lam)[:, None] * jax.nn.one_hot(x0i, n_in, dtype=jnp.float32)
            + lam[:, None] * jax.nn.one_hot(x1i, n_in, dtype=jnp.float32))


def _gg_kernel(lhs_ref, band_ref, call_ref, r2_ref, r4_ref, r8_ref,
               o4_ref, o3_ref, o2_ref, o1_ref):
    H = o4_ref.shape[1]
    W = o4_ref.shape[2]

    # 7x7 conv + bias as ONE MXU contraction (bias is injected via the
    # constant-1 lane in the stacked LHS): (H, 7*CWp_pad) @ (7*CWp_pad, 128).
    acc = jnp.dot(lhs_ref[0], band_ref[...], preferred_element_type=jnp.float32)

    x4 = jax.nn.sigmoid(acc[:, :W])                     # (H, W) f32
    o4_ref[0] = x4

    x4b = x4.astype(jnp.bfloat16)

    # Fused column interpolation for all three scales: one lane-dense matmul.
    t = jnp.dot(x4b, call_ref[...], preferred_element_type=jnp.float32)

    def row_up(r_ref, off, s):
        # Column-interpolated segment starts on a 128-lane boundary.
        ts = t[:, off:off + s * W].astype(jnp.bfloat16)             # (H, s*W)
        r = r_ref[...][:, :H]                                       # (s*H, H)
        return jnp.dot(r, ts, preferred_element_type=jnp.float32)   # (s*H, s*W)

    off = 0
    for o_ref, r_ref, s in zip((o3_ref, o2_ref, o1_ref),
                               (r2_ref, r4_ref, r8_ref), _UP):
        o_ref[0] = row_up(r_ref, off, s)
        off += _round_up(s * W, _LANE)


@jax.jit
def gg_block_forward(x, weight, bias):
    """x: (B,C,H,W) f32; weight: (1,C,7,7); bias: (1,).
    Returns (x4, x3, x2, x1), each (B, 1, s*H, s*W) for s in (1, 2, 4, 8)."""
    B, C, H, W = x.shape
    Hp, Wp = H + 2 * _P, W + 2 * _P
    CWp = C * Wp
    CWp_pad = _round_up(CWp + 1, _LANE)      # +1 reserves the bias ones-lane
    Wpad = _round_up(W, _LANE)
    Hpad = _round_up(H, _LANE)

    xf = x.astype(jnp.float32)

    # (B, Hp, C*Wp): per-channel zero-padded rows laid side by side along lanes.
    xt = jnp.transpose(xf, (0, 2, 1, 3))                           # (B,H,C,W)
    xt = jnp.pad(xt, ((0, 0), (_P, _P), (0, 0), (_P, _P)))         # (B,Hp,C,Wp)
    xp = xt.reshape(B, Hp, CWp)

    # Stacked LHS: the 7 row-shifted windows side by side, each segment padded
    # to a 128-lane boundary; lane CWp of segment 0 is a constant 1.0 (bias).
    segs = []
    for dy in range(_K):
        seg = jnp.zeros((B, H, CWp_pad), jnp.float32)
        seg = seg.at[:, :, :CWp].set(xp[:, dy:dy + H, :])
        if dy == 0:
            seg = seg.at[:, :, CWp].set(1.0)
        segs.append(seg)
    lhs = jnp.concatenate(segs, axis=-1).astype(jnp.bfloat16)      # (B,H,K*CWp_pad)

    # Stacked banded conv weight: band[dy*CWp_pad + c*Wp + p, w] = w[c,dy,p-w]
    # for 0 <= p - w < 7; row CWp (segment 0) carries the bias; N padded to 128.
    wk = weight.reshape(C, _K, _K).astype(jnp.float32)
    tap = jnp.arange(Wp)[:, None] - jnp.arange(W)[None, :]         # (Wp,W) = p-w
    valid = ((tap >= 0) & (tap < _K)).astype(jnp.float32)
    core = wk[:, :, jnp.clip(tap, 0, _K - 1)] * valid[None, None]  # (C,K,Wp,W)
    core = jnp.transpose(core, (1, 0, 2, 3)).reshape(_K, CWp, W)
    band = jnp.zeros((_K, CWp_pad, Wpad), jnp.float32)
    band = band.at[:, :CWp, :W].set(core)
    band = band.at[0, CWp, :W].set(bias.astype(jnp.float32)[0])
    band = band.reshape(_K * CWp_pad, Wpad).astype(jnp.bfloat16)

    # Fused column-interpolation matrix (segments on 128-lane boundaries) and
    # 128-lane padded row-interpolation matrices.
    csegs, c_width = [], 0
    for s in _UP:
        m = _bilinear_matrix(W, s).T                               # (W, s*W)
        w_seg = _round_up(s * W, _LANE)
        csegs.append(jnp.pad(m, ((0, 0), (0, w_seg - s * W))))
        c_width += w_seg
    c_all = jnp.concatenate(csegs, axis=1).astype(jnp.bfloat16)    # (W, c_width)

    rmats = [jnp.pad(_bilinear_matrix(H, s), ((0, 0), (0, Hpad - H)))
             .astype(jnp.bfloat16) for s in _UP]                   # (s*H, Hpad)

    # VMEM budget from the (8,128)-padded, double-buffered block footprint;
    # capped at 48 MiB (below v7x's 64 MiB physical VMEM).
    def blk(r, c, item):
        return _round_up(r, 8) * _round_up(c, _LANE) * item
    block_bytes = (2 * blk(H, _K * CWp_pad, 2)
                   + 2 * blk(_K * CWp_pad, Wpad, 2)
                   + 2 * blk(W, c_width, 2)
                   + 2 * sum(blk(s * H, Hpad, 2) for s in _UP)
                   + 2 * sum(blk(s * H, s * W, 4) for s in _SCALES))
    vmem_limit = int(min(max(4 * block_bytes, 16 * 2 ** 20), 48 * 2 ** 20))

    const2 = lambda i: (0, 0)
    in_specs = [
        pl.BlockSpec((1, H, _K * CWp_pad), lambda i: (i, 0, 0)),   # stacked x
        pl.BlockSpec((_K * CWp_pad, Wpad), const2),                # stacked band
        pl.BlockSpec((W, c_width), const2),                        # fused col-interp
        pl.BlockSpec((2 * H, Hpad), const2),                       # row-interp x2
        pl.BlockSpec((4 * H, Hpad), const2),                       # row-interp x4
        pl.BlockSpec((8 * H, Hpad), const2),                       # row-interp x8
    ]
    out_shapes = tuple(jax.ShapeDtypeStruct((B, s * H, s * W), jnp.float32)
                       for s in _SCALES)
    out_specs = tuple(pl.BlockSpec((1, s * H, s * W), lambda i: (i, 0, 0))
                      for s in _SCALES)

    outs = pl.pallas_call(
        _gg_kernel,
        out_shape=out_shapes,
        grid=(B,),                       # B >= 2 -> both v7x TCs busy
        in_specs=in_specs,
        out_specs=out_specs,
        compiler_params=pltpu.CompilerParams(
            dimension_semantics=("parallel",),
            vmem_limit_bytes=vmem_limit),
    )(lhs, band, c_all, *rmats)

    return tuple(o.reshape(B, 1, s * H, s * W) for o, s in zip(outs, _SCALES))


if __name__ == "__main__":
    key = jax.random.PRNGKey(0)
    kx, kw, kb = jax.random.split(key, 3)

    B, C, H, W = 2, 4, 16, 16
    x = jax.random.normal(kx, (B, C, H, W), dtype=jnp.float32)
    # Deterministic synthetic parameters (Conv2d(channel, 1, 7, 1, 3)):
    weight = 0.1 * jax.random.normal(kw, (1, C, 7, 7), dtype=jnp.float32)
    bias = 0.1 * jax.random.normal(kb, (1,), dtype=jnp.float32)

    x4, x3, x2, x1 = jax.block_until_ready(gg_block_forward(x, weight, bias))

    assert x4.shape == (B, 1, H, W)
    assert x3.shape == (B, 1, 2 * H, 2 * W)
    assert x2.shape == (B, 1, 4 * H, 4 * W)
    assert x1.shape == (B, 1, 8 * H, 8 * W)

    # Reference conv + sigmoid (full precision).
    x4_ref = jax.nn.sigmoid(
        jax.lax.conv_general_dilated(
            x, weight, window_strides=(1, 1), padding=((3, 3), (3, 3)),
            dimension_numbers=("NCHW", "OIHW", "NCHW"),
            precision=jax.lax.Precision.HIGHEST)
        + bias.reshape(1, 1, 1, 1))
    # Conv operands are deliberately bf16 (f32 accumulation) -> ~1e-3-level
    # quantization error post-sigmoid.
    assert jnp.allclose(x4, x4_ref, atol=1e-2, rtol=0.0), \
        float(jnp.max(jnp.abs(x4 - x4_ref)))

    # Reference bilinear upsample (align_corners=False, PyTorch semantics),
    # gather/lerp formulation independent of the in-kernel matmul one.
    def up_ref(xin, s):
        n_h, n_w = xin.shape[2], xin.shape[3]

        def axis(n, sc):
            dst = jnp.arange(n * sc, dtype=jnp.float32)
            src = jnp.maximum((dst + 0.5) / sc - 0.5, 0.0)
            i0 = jnp.clip(jnp.floor(src).astype(jnp.int32), 0, n - 1)
            i1 = jnp.minimum(i0 + 1, n - 1)
            return i0, i1, src - jnp.floor(src)

        r0, r1, rl = axis(n_h, s)
        c0, c1, cl = axis(n_w, s)
        g = lambda ri, ci: xin[:, :, ri][:, :, :, ci]
        top = g(r0, c0) * (1.0 - cl) + g(r0, c1) * cl
        bot = g(r1, c0) * (1.0 - cl) + g(r1, c1) * cl
        return top * (1.0 - rl)[:, None] + bot * rl[:, None]

    # bf16 operands in the conv + both interp matmuls accumulate a small
    # absolute quantization error on top of the x4 error.
    for s, o in ((2, x3), (4, x2), (8, x1)):
        ref = up_ref(x4_ref, s)
        assert jnp.allclose(o, ref, atol=2.5e-2, rtol=0.0), \
            (s, float(jnp.max(jnp.abs(o - ref))))

    assert all(bool(jnp.isfinite(v).all()) for v in (x4, x3, x2, x1))
    print("KERNEL_OK")
</pallas_src>

<mosaic_0001>
module attributes {stable_mosaic.version = 11 : i64} {
  func.func @_gg_kernel(%arg0: i32, %arg1: memref<1x16x896xbf16, #tpu.memory_space<vmem>>, %arg2: memref<896x128xbf16, #tpu.memory_space<vmem>>, %arg3: memref<16x384xbf16, #tpu.memory_space<vmem>>, %arg4: memref<32x128xbf16, #tpu.memory_space<vmem>>, %arg5: memref<64x128xbf16, #tpu.memory_space<vmem>>, %arg6: memref<128x128xbf16, #tpu.memory_space<vmem>>, %arg7: memref<1x16x16xf32, #tpu.memory_space<vmem>>, %arg8: memref<1x32x32xf32, #tpu.memory_space<vmem>>, %arg9: memref<1x64x64xf32, #tpu.memory_space<vmem>>, %arg10: memref<1x128x128xf32, #tpu.memory_space<vmem>>) attributes {dimension_semantics = [#tpu.dimension_semantics<parallel>], iteration_bounds = array<i64: 2>, scalar_prefetch = 0 : i64, scratch_operands = 0 : i64, tpu.core_type = #tpu.core_type<tc>, window_params = [{transform_indices = @transform_0, window_bounds = array<i64: 1, 16, 896>}, {pipeline_mode = #tpu.pipeline_mode<synchronous>, transform_indices = @transform_1, window_bounds = array<i64: 896, 128>}, {pipeline_mode = #tpu.pipeline_mode<synchronous>, transform_indices = @transform_2, window_bounds = array<i64: 16, 384>}, {pipeline_mode = #tpu.pipeline_mode<synchronous>, transform_indices = @transform_3, window_bounds = array<i64: 32, 128>}, {pipeline_mode = #tpu.pipeline_mode<synchronous>, transform_indices = @transform_4, window_bounds = array<i64: 64, 128>}, {pipeline_mode = #tpu.pipeline_mode<synchronous>, transform_indices = @transform_5, window_bounds = array<i64: 128, 128>}, {transform_indices = @transform_6, window_bounds = array<i64: 1, 16, 16>}, {transform_indices = @transform_7, window_bounds = array<i64: 1, 32, 32>}, {transform_indices = @transform_8, window_bounds = array<i64: 1, 64, 64>}, {transform_indices = @transform_9, window_bounds = array<i64: 1, 128, 128>}]} {
    %c0 = arith.constant 0 : index
    %c0_0 = arith.constant 0 : index
    %c0_1 = arith.constant 0 : index
    %0 = vector.load %arg1[%c0, %c0_0, %c0_1] : memref<1x16x896xbf16, #tpu.memory_space<vmem>>, vector<1x16x896xbf16>
    %1 = vector.shape_cast %0 : vector<1x16x896xbf16> to vector<16x896xbf16>
    %c0_2 = arith.constant 0 : index
    %c0_3 = arith.constant 0 : index
    %2 = vector.load %arg2[%c0_2, %c0_3] : memref<896x128xbf16, #tpu.memory_space<vmem>>, vector<896x128xbf16>
    %cst = arith.constant dense<0.000000e+00> : vector<16x128xf32>
    %3 = tpu.matmul %1, %2, %cst {dimension_numbers = #tpu.dot_dimension_numbers<[1], [0], [0], [1], [0, 0, 1, 1], [], []>} : vector<16x896xbf16>, vector<896x128xbf16>, vector<16x128xf32> -> vector<16x128xf32>
    %4 = vector.extract_strided_slice %3 {offsets = [0, 0], sizes = [16, 16], strides = [1, 1]} : vector<16x128xf32> to vector<16x16xf32>
    %5 = arith.negf %4 : vector<16x16xf32>
    %6 = math.exp %5 : vector<16x16xf32>
    %cst_4 = arith.constant 1.000000e+00 : f32
    %7 = vector.broadcast %cst_4 : f32 to vector<16x16xf32>
    %8 = arith.addf %7, %6 : vector<16x16xf32>
    %9 = arith.divf %7, %8 : vector<16x16xf32>
    %c0_5 = arith.constant 0 : index
    %c0_6 = arith.constant 0 : index
    %c0_7 = arith.constant 0 : index
    %10 = vector.load %arg7[%c0_5, %c0_6, %c0_7] : memref<1x16x16xf32, #tpu.memory_space<vmem>>, vector<1x16x16xf32>
    %11 = vector.shape_cast %10 : vector<1x16x16xf32> to vector<16x16xf32>
    %12 = vector.shape_cast %9 : vector<16x16xf32> to vector<1x16x16xf32>
    tpu.vector_store %arg7[%c0_5, %c0_6, %c0_7], %12 {strides = array<i32>} : memref<1x16x16xf32, #tpu.memory_space<vmem>>, vector<1x16x16xf32>,
    %13 = arith.truncf %9 : vector<16x16xf32> to vector<16x16xbf16>
    %c0_8 = arith.constant 0 : index
    %c0_9 = arith.constant 0 : index
    %14 = vector.load %arg3[%c0_8, %c0_9] : memref<16x384xbf16, #tpu.memory_space<vmem>>, vector<16x384xbf16>
    %cst_10 = arith.constant dense<0.000000e+00> : vector<16x384xf32>
    %15 = tpu.matmul %13, %14, %cst_10 {dimension_numbers = #tpu.dot_dimension_numbers<[1], [0], [0], [1], [0, 0, 1, 1], [], []>} : vector<16x16xbf16>, vector<16x384xbf16>, vector<16x384xf32> -> vector<16x384xf32>
    %16 = vector.extract_strided_slice %15 {offsets = [0, 0], sizes = [16, 32], strides = [1, 1]} : vector<16x384xf32> to vector<16x32xf32>
    %17 = arith.truncf %16 : vector<16x32xf32> to vector<16x32xbf16>
    %c0_11 = arith.constant 0 : index
    %c0_12 = arith.constant 0 : index
    %18 = vector.load %arg4[%c0_11, %c0_12] : memref<32x128xbf16, #tpu.memory_space<vmem>>, vector<32x128xbf16>
    %19 = vector.extract_strided_slice %18 {offsets = [0, 0], sizes = [32, 16], strides = [1, 1]} : vector<32x128xbf16> to vector<32x16xbf16>
    %cst_13 = arith.constant dense<0.000000e+00> : vector<32x32xf32>
    %20 = tpu.matmul %19, %17, %cst_13 {dimension_numbers = #tpu.dot_dimension_numbers<[1], [0], [0], [1], [0, 0, 1, 1], [], []>} : vector<32x16xbf16>, vector<16x32xbf16>, vector<32x32xf32> -> vector<32x32xf32>
    %c0_14 = arith.constant 0 : index
    %c0_15 = arith.constant 0 : index
    %c0_16 = arith.constant 0 : index
    %21 = vector.load %arg8[%c0_14, %c0_15, %c0_16] : memref<1x32x32xf32, #tpu.memory_space<vmem>>, vector<1x32x32xf32>
    %22 = vector.shape_cast %21 : vector<1x32x32xf32> to vector<32x32xf32>
    %23 = vector.shape_cast %20 : vector<32x32xf32> to vector<1x32x32xf32>
    tpu.vector_store %arg8[%c0_14, %c0_15, %c0_16], %23 {strides = array<i32>} : memref<1x32x32xf32, #tpu.memory_space<vmem>>, vector<1x32x32xf32>,
    %24 = vector.extract_strided_slice %15 {offsets = [0, 128], sizes = [16, 64], strides = [1, 1]} : vector<16x384xf32> to vector<16x64xf32>
    %25 = arith.truncf %24 : vector<16x64xf32> to vector<16x64xbf16>
    %c0_17 = arith.constant 0 : index
    %c0_18 = arith.constant 0 : index
    %26 = vector.load %arg5[%c0_17, %c0_18] : memref<64x128xbf16, #tpu.memory_space<vmem>>, vector<64x128xbf16>
    %27 = vector.extract_strided_slice %26 {offsets = [0, 0], sizes = [64, 16], strides = [1, 1]} : vector<64x128xbf16> to vector<64x16xbf16>
    %cst_19 = arith.constant dense<0.000000e+00> : vector<64x64xf32>
    %28 = tpu.matmul %27, %25, %cst_19 {dimension_numbers = #tpu.dot_dimension_numbers<[1], [0], [0], [1], [0, 0, 1, 1], [], []>} : vector<64x16xbf16>, vector<16x64xbf16>, vector<64x64xf32> -> vector<64x64xf32>
    %c0_20 = arith.constant 0 : index
    %c0_21 = arith.constant 0 : index
    %c0_22 = arith.constant 0 : index
    %29 = vector.load %arg9[%c0_20, %c0_21, %c0_22] : memref<1x64x64xf32, #tpu.memory_space<vmem>>, vector<1x64x64xf32>
    %30 = vector.shape_cast %29 : vector<1x64x64xf32> to vector<64x64xf32>
    %31 = vector.shape_cast %28 : vector<64x64xf32> to vector<1x64x64xf32>
    tpu.vector_store %arg9[%c0_20, %c0_21, %c0_22], %31 {strides = array<i32>} : memref<1x64x64xf32, #tpu.memory_space<vmem>>, vector<1x64x64xf32>,
    %32 = vector.extract_strided_slice %15 {offsets = [0, 256], sizes = [16, 128], strides = [1, 1]} : vector<16x384xf32> to vector<16x128xf32>
    %33 = arith.truncf %32 : vector<16x128xf32> to vector<16x128xbf16>
    %c0_23 = arith.constant 0 : index
    %c0_24 = arith.constant 0 : index
    %34 = vector.load %arg6[%c0_23, %c0_24] : memref<128x128xbf16, #tpu.memory_space<vmem>>, vector<128x128xbf16>
    %35 = vector.extract_strided_slice %34 {offsets = [0, 0], sizes = [128, 16], strides = [1, 1]} : vector<128x128xbf16> to vector<128x16xbf16>
    %cst_25 = arith.constant dense<0.000000e+00> : vector<128x128xf32>
    %36 = tpu.matmul %35, %33, %cst_25 {dimension_numbers = #tpu.dot_dimension_numbers<[1], [0], [0], [1], [0, 0, 1, 1], [], []>} : vector<128x16xbf16>, vector<16x128xbf16>, vector<128x128xf32> -> vector<128x128xf32>
    %c0_26 = arith.constant 0 : index
    %c0_27 = arith.constant 0 : index
    %c0_28 = arith.constant 0 : index
    %37 = vector.load %arg10[%c0_26, %c0_27, %c0_28] : memref<1x128x128xf32, #tpu.memory_space<vmem>>, vector<1x128x128xf32>
    %38 = vector.shape_cast %37 : vector<1x128x128xf32> to vector<128x128xf32>
    %39 = vector.shape_cast %36 : vector<128x128xf32> to vector<1x128x128xf32>
    tpu.vector_store %arg10[%c0_26, %c0_27, %c0_28], %39 {strides = array<i32>} : memref<1x128x128xf32, #tpu.memory_space<vmem>>, vector<1x128x128xf32>,
    return
  }
  func.func @transform_0(%arg0: i32) -> (i32, i32, i32) {
    %c0_i32 = arith.constant 0 : i32
    %c0_i32_0 = arith.constant 0 : i32
    %c0_i32_1 = arith.constant 0 : i32
    return %arg0, %c0_i32, %c0_i32_0 : i32, i32, i32
  }
  func.func @transform_1(%arg0: i32) -> (i32, i32) {
    %c0_i32 = arith.constant 0 : i32
    %c0_i32_0 = arith.constant 0 : i32
    %c0_i32_1 = arith.constant 0 : i32
    return %c0_i32, %c0_i32_0 : i32, i32
  }
  func.func @transform_2(%arg0: i32) -> (i32, i32) {
    %c0_i32 = arith.constant 0 : i32
    %c0_i32_0 = arith.constant 0 : i32
    %c0_i32_1 = arith.constant 0 : i32
    return %c0_i32, %c0_i32_0 : i32, i32
  }
  func.func @transform_3(%arg0: i32) -> (i32, i32) {
    %c0_i32 = arith.constant 0 : i32
    %c0_i32_0 = arith.constant 0 : i32
    %c0_i32_1 = arith.constant 0 : i32
    return %c0_i32, %c0_i32_0 : i32, i32
  }
  func.func @transform_4(%arg0: i32) -> (i32, i32) {
    %c0_i32 = arith.constant 0 : i32
    %c0_i32_0 = arith.constant 0 : i32
    %c0_i32_1 = arith.constant 0 : i32
    return %c0_i32, %c0_i32_0 : i32, i32
  }
  func.func @transform_5(%arg0: i32) -> (i32, i32) {
    %c0_i32 = arith.constant 0 : i32
    %c0_i32_0 = arith.constant 0 : i32
    %c0_i32_1 = arith.constant 0 : i32
    return %c0_i32, %c0_i32_0 : i32, i32
  }
  func.func @transform_6(%arg0: i32) -> (i32, i32, i32) {
    %c0_i32 = arith.constant 0 : i32
    %c0_i32_0 = arith.constant 0 : i32
    %c0_i32_1 = arith.constant 0 : i32
    return %arg0, %c0_i32, %c0_i32_0 : i32, i32, i32
  }
  func.func @transform_7(%arg0: i32) -> (i32, i32, i32) {
    %c0_i32 = arith.constant 0 : i32
    %c0_i32_0 = arith.constant 0 : i32
    %c0_i32_1 = arith.constant 0 : i32
    return %arg0, %c0_i32, %c0_i32_0 : i32, i32, i32
  }
  func.func @transform_8(%arg0: i32) -> (i32, i32, i32) {
    %c0_i32 = arith.constant 0 : i32
    %c0_i32_0 = arith.constant 0 : i32
    %c0_i32_1 = arith.constant 0 : i32
    return %arg0, %c0_i32, %c0_i32_0 : i32, i32, i32
  }
  func.func @transform_9(%arg0: i32) -> (i32, i32, i32) {
    %c0_i32 = arith.constant 0 : i32
    %c0_i32_0 = arith.constant 0 : i32
    %c0_i32_1 = arith.constant 0 : i32
    return %arg0, %c0_i32, %c0_i32_0 : i32, i32, i32
  }
}

</mosaic_0001>

<bundles_post_ra>
// kernel: gg_block_forward.1
= control target key start
LH: loop header
LB: loop body
LE: loop exit
PB: predicated region body
PF: predicated region fallthrough
CT: control target
= control target key end

     0   :  { %s2929_s0 = inlined_call_operand.vmem [shape: bf16[2,16,896], index: 0, kind: input, shape index: {}]   ;;  %s2930_s1 = inlined_call_operand.vmem [shape: bf16[896,128], index: 1, kind: input, shape index: {}]   ;;  %s2931_s2 = inlined_call_operand.vmem [shape: bf16[16,384], index: 2, kind: input, shape index: {}]   ;;  %s2932_s3 = inlined_call_operand.vmem [shape: bf16[32,128], index: 3, kind: input, shape index: {}]   ;;  %s2933_s4 = inlined_call_operand.vmem [shape: bf16[64,128], index: 4, kind: input, shape index: {}]   ;;  %s2934_s5 = inlined_call_operand.vmem [shape: bf16[128,128], index: 5, kind: input, shape index: {}]   ;;  %s2935_s6 = inlined_call_operand.hbm [shape: f32[2,16,16], index: 6, kind: output, shape index: {0}]   ;;  %s2936_s7 = inlined_call_operand.hbm [shape: f32[2,32,32], index: 7, kind: output, shape index: {1}]   ;;  %s2937_s8 = inlined_call_operand.hbm [shape: f32[2,64,64], index: 8, kind: output, shape index: {2}]   ;;  %s2938_s9 = inlined_call_operand.hbm [shape: f32[2,128,128], index: 9, kind: output, shape index: {3}]  }
   0x1   :  { %2944 = sst [smem:[#allocation12_spill]] %s2929_s0 }
   0x2   :  { %2945 = sst [smem:[#allocation13_spill]] %s2930_s1 }
   0x3   :  { %2946 = sst [smem:[#allocation14_spill]] %s2931_s2 }
   0x4   :  { %15 = vsyncpa [#allocation3], 0 }
   0x5   :  { %17 = vsyncpa [#allocation3 + $0x1], 0 }
   0x6   :  { %18 = vsyncpa [#allocation5], 0 }
   0x7   :  { %20 = vsyncpa [#allocation5 + $0x1], 0 }
   0x8   :  { %21 = vsyncpa [#allocation8], 0 }
   0x9   :  { %23 = vsyncpa [#allocation8 + $0x1], 0  ;;  %s2401_s30 = smov 0   ;;  %s2403_s10 = smov 0  }
   0xa   :  { %s2405_s11 = smov 0   ;;  %s2407_s12 = smov 0  }
   0xb LB: > { %s2422_s13 = sadd.s32 4294967295, %s2340_s12   ;;  %s2939_s14 = sadd.s32 4294967294, %s2340_s12   ;;  %s2340_s12 = sphi %s2407_s12, %s2959_s12   ;;  %s2336_s11 = sphi %s2405_s11, %s2958_s11   ;;  %s2332_s10 = sphi %s2403_s10, %s2957_s10   ;;  %s2328_s30 = sphi %s2401_s30, %s2956_s30  }
   0xc   : > { %s2426_s15 = sadd.s32 1, %s2340_s12   ;;  %s167_s16 = sadd.s32 1, %s2336_s11 }
   0xd   : > { %s164_s17 = ssub.s32 %s2340_s12, %s2426_s15  ;;  %p177_p0 = scmp.ne.s32.totalorder %s2336_s11, %s2332_s10 }
   0xe   : > { %p165_p1 = scmp.eq.s32.totalorder %s164_s17, 0  ;;  %p178_p2 = scmp.eq.s32.totalorder %s2422_s13, 1 }
   0xf   : > { %p183_p3 = scmp.ne.s32.totalorder %s2332_s10, %s2328_s30  ;;  %p184_p4 = scmp.eq.s32.totalorder %s2939_s14, 1 }
  0x10   : > { %s2439_s18 = scalar_select %p165_p1, %s2336_s11, %s167_s16  }
  0x11   : > { %p2441_p5 = por %p178_p2, %p177_p0  ;;  %p2445_p6 = por %p184_p4, %p183_p3 }
  0x12   : > { %p1758_p7 = scmp.ge.s32.totalorder %s2340_s12, 1  ;;  %p303_p8 = scmp.lt.s32.totalorder %s2340_s12, 3 }
  0x14   : > { %p304_p9 = pnand %p1758_p7, %p303_p8 }
  0x15   : > { %s2949_s1 = sld [smem:[#allocation13_spill]] (!%p304_p9)  ;;  %p354_p10 = scmp.lt.s32.totalorder (!%p304_p9), %s2422_s13, 1  ;;  %v2342_v36 = vmov (!%p304_p9), 0.0   ;;  %vm2343_vm0 = vmmov (!%p304_p9), 0   ;;  %vm1028_vm1 = vcmask (!%p304_p9), 130048  }
  0x16   : > { %307 = sbr.rel (%p304_p9) target bundleno = 843 (0x34b), region = 44  ;;  %s2950_s0 = sld [smem:[#allocation12_spill]] (!%p304_p9) }
  0x17   : > { %s2951_s2 = sld [smem:[#allocation14_spill]] (!%p304_p9)  ;;  %s1876_s23 = sshll.u32 (!%p304_p9), %s2422_s13, 8 }
  0x18   : > { %s2345_s29 = smov (!%p304_p9), [#allocation2]  }
  0x19   : > { %s2190_s22 = sshll.u32 (!%p304_p9), %s2345_s29, 4  ;;  %s2191_s22 = int_to_ptr.vmem [resolvable:$false] %s2190_s22 }
  0x1a   : > { %s2192_s14 = scalar_lea.vmem (!%p304_p9), %s2191_s22, 512 }
  0x1b   : > { %v2094_v0 = vld [vmem:[%s2949_s1 + $0x40] sm:$0xff] (!%p304_p9)   ;;  %v2098_v4 = vld [vmem:[%s2949_s1 + $0x48] sm:$0xff] (!%p304_p9)   ;;  %v2102_v8 = vld [vmem:[%s2949_s1 + $0x50] sm:$0xff] (!%p304_p9)  }
  0x1c   : > { %v2095_v1 = vld [vmem:[%s2949_s1 + $0xc0] sm:$0xff] (!%p304_p9)   ;;  %1880 = vmatprep.subr.bf16.mxu0 (!%p304_p9), %v2094_v0  ;;  %v2099_v5 = vld [vmem:[%s2949_s1 + $0xc8] sm:$0xff] (!%p304_p9)   ;;  %v2103_v9 = vld [vmem:[%s2949_s1 + $0xd0] sm:$0xff] (!%p304_p9)  }
  0x1d   : > { %v2096_v2 = vld [vmem:[%s2949_s1] sm:$0xff]   ;;  %1902 = vmatprep.subr.bf16.mxu1 %v2095_v1  ;;  %v2100_v6 = vld [vmem:[%s2949_s1 + $0x8] sm:$0xff]   ;;  %v2104_v10 = vld [vmem:[%s2949_s1 + $0x10] sm:$0xff]   ;;  %s355_s21 = scalar_select %p354_p10, %s2422_s13, 1 }
  0x1e   : > { %v2097_v3 = vld [vmem:[%s2949_s1 + $0x80] sm:$0xff]   ;;  %1881 = vmatpush3.bf16.msra.mxu0 %v2096_v2  ;;  %v2101_v7 = vld [vmem:[%s2949_s1 + $0x88] sm:$0xff]   ;;  %v2105_v11 = vld [vmem:[%s2949_s1 + $0x90] sm:$0xff]   ;;  %v2344_v2 = vmov 0  }
  0x1f   : > { %1903 = vmatpush3.bf16.msra.mxu1 %v2097_v3  ;;  %1882 = vmatprep.subr.bf16.mxu0 %v2098_v4  ;;  %v2106_v12 = vld [vmem:[%s2949_s1 + $0x58] sm:$0xff]   ;;  %v2110_v16 = vld [vmem:[%s2949_s1 + $0x60] sm:$0xff]   ;;  %v2114_v20 = vld [vmem:[%s2949_s1 + $0x68] sm:$0xff]   ;;  %s2034_s16 = smul.u32 56, %s355_s21 }
  0x20   : > { %1904 = vmatprep.subr.bf16.mxu1 %v2099_v5  ;;  %v2107_v13 = vld [vmem:[%s2949_s1 + $0xd8] sm:$0xff]   ;;  %v2111_v17 = vld [vmem:[%s2949_s1 + $0xe0] sm:$0xff]   ;;  %v2115_v21 = vld [vmem:[%s2949_s1 + $0xe8] sm:$0xff]  }
  0x21   : > { %v2108_v14 = vld [vmem:[%s2949_s1 + $0x18] sm:$0xff]   ;;  %v2112_v18 = vld [vmem:[%s2949_s1 + $0x20] sm:$0xff]   ;;  %v2116_v22 = vld [vmem:[%s2949_s1 + $0x28] sm:$0xff]   ;;  %s2546_s17 = scalar_lea.vmem %s2950_s0, %s2034_s16  ;;  %s2727_s16 = scalar_lea.hbm %s2935_s6, %s1876_s23 }
  0x22   : > { %1883 = vmatpush3.bf16.msra.mxu0 %v2100_v6  ;;  %v2109_v15 = vld [vmem:[%s2949_s1 + $0x98] sm:$0xff]   ;;  %v2113_v19 = vld [vmem:[%s2949_s1 + $0xa0] sm:$0xff]   ;;  %v2117_v23 = vld [vmem:[%s2949_s1 + $0xa8] sm:$0xff]  }
  0x23   : > { %1905 = vmatpush3.bf16.msra.mxu1 %v2101_v7  ;;  %1884 = vmatprep.subr.bf16.mxu0 %v2102_v8  ;;  %v2118_v24 = vld [vmem:[%s2949_s1 + $0x70] sm:$0xff]   ;;  %v2122_v28 = vld [vmem:[%s2949_s1 + $0x78] sm:$0xff]   ;;  %v2128_v33 = vld [vmem:[%s2546_s17 + $0x4] ss:$28 sps:$4 sm:$0xff]  }
  0x24   : > { %1906 = vmatprep.subr.bf16.mxu1 %v2103_v9  ;;  %v2119_v25 = vld [vmem:[%s2949_s1 + $0xf0] sm:$0xff]   ;;  %v2123_v29 = vld [vmem:[%s2949_s1 + $0xf8] sm:$0xff]   ;;  %v2129_v34 = vld [vmem:[%s2546_s17 + $0x8] ss:$28 sps:$4 sm:$0xff]   ;;  %884 = vmatprep.mubr.bf16.mxu0 %v2128_v33 }
  0x25   : > { %v2120_v26 = vld [vmem:[%s2949_s1 + $0x30] sm:$0xff]   ;;  %v2124_v30 = vld [vmem:[%s2949_s1 + $0x38] sm:$0xff]   ;;  %v2131_v35 = vld [vmem:[%s2546_s17 + $0xc] ss:$28 sps:$4 sm:$0xff]  }
  0x26   : > { %1885 = vmatpush3.bf16.msra.mxu0 %v2104_v10  ;;  %v2121_v27 = vld [vmem:[%s2949_s1 + $0xb0] sm:$0xff]   ;;  %v2125_v31 = vld [vmem:[%s2949_s1 + $0xb8] sm:$0xff]   ;;  %v2132_v37 = vld [vmem:[%s2949_s1 + $0x140] sm:$0xff]   ;;  %925 = vmatprep.mubr.bf16.mxu1 %v2131_v35 }
  0x27   : > { %1907 = vmatpush3.bf16.msra.mxu1 %v2105_v11  ;;  %1886 = vmatprep.subr.bf16.mxu0 %v2106_v12  ;;  %v2126_v32 = vld [vmem:[%s2546_s17] ss:$28 sps:$4 sm:$0xff]   ;;  %v2135_v40 = vld [vmem:[%s2949_s1 + $0x148] sm:$0xff]   ;;  %v2138_v43 = vld [vmem:[%s2949_s1 + $0x150] sm:$0xff]  }
  0x28   : > { %1908 = vmatprep.subr.bf16.mxu1 %v2107_v13  ;;  %v2133_v38 = vld [vmem:[%s2949_s1 + $0x100] sm:$0xff]   ;;  %v2136_v41 = vld [vmem:[%s2949_s1 + $0x108] sm:$0xff]   ;;  %v2139_v44 = vld [vmem:[%s2949_s1 + $0x110] sm:$0xff]  }
  0x29   : > { %v2134_v39 = vld [vmem:[%s2949_s1 + $0x180] sm:$0xff]   ;;  %v2137_v42 = vld [vmem:[%s2949_s1 + $0x188] sm:$0xff]   ;;  %v2140_v45 = vld [vmem:[%s2949_s1 + $0x190] sm:$0xff]  }
  0x2a   : > { %1887 = vmatpush3.bf16.msra.mxu0 %v2108_v14  ;;  %v2141_v46 = vld [vmem:[%s2949_s1 + $0x158] sm:$0xff]   ;;  %v2144_v49 = vld [vmem:[%s2949_s1 + $0x160] sm:$0xff]   ;;  %v2147_v52 = vld [vmem:[%s2949_s1 + $0x168] sm:$0xff]  }
  0x2b   : > { %1909 = vmatpush3.bf16.msra.mxu1 %v2109_v15  ;;  %1888 = vmatprep.subr.bf16.mxu0 %v2110_v16  ;;  %v2142_v47 = vld [vmem:[%s2949_s1 + $0x118] sm:$0xff]   ;;  %v2145_v50 = vld [vmem:[%s2949_s1 + $0x120] sm:$0xff]   ;;  %v2148_v53 = vld [vmem:[%s2949_s1 + $0x128] sm:$0xff]  }
  0x2c   : > { %1910 = vmatprep.subr.bf16.mxu1 %v2111_v17  ;;  %v2143_v48 = vld [vmem:[%s2949_s1 + $0x198] sm:$0xff]   ;;  %v2146_v51 = vld [vmem:[%s2949_s1 + $0x1a0] sm:$0xff]   ;;  %v2149_v54 = vld [vmem:[%s2949_s1 + $0x1a8] sm:$0xff]  }
  0x2d   : > { %v2150_v55 = vld [vmem:[%s2949_s1 + $0x170] sm:$0xff]   ;;  %v2153_v59 = vld [vmem:[%s2949_s1 + $0x178] sm:$0xff]   ;;  %v2160_v0 = vld [vmem:[%s2951_s2] ss:$12 sps:$4 sm:$0xff]  }
  0x2e   : > { %1889 = vmatpush3.bf16.msra.mxu0 %v2112_v18  ;;  %v2151_v56 = vld [vmem:[%s2949_s1 + $0x130] sm:$0xff]   ;;  %v2154_v60 = vld [vmem:[%s2949_s1 + $0x138] sm:$0xff]  }
  0x2f   : > { %1911 = vmatpush3.bf16.msra.mxu1 %v2113_v19  ;;  %1890 = vmatprep.subr.bf16.mxu0 %v2114_v20  ;;  %v2152_v57 = vld [vmem:[%s2949_s1 + $0x1b0] sm:$0xff]   ;;  %v2158_v61 = vld [vmem:[%s2949_s1 + $0x1b8] sm:$0xff]  }
  0x30   : > { %1912 = vmatprep.subr.bf16.mxu1 %v2115_v21  ;;  %v2157_v58 = vld [vmem:[%s2546_s17 + $0x14] ss:$28 sps:$4 sm:$0xff]  }
  0x31   : > { %v2155_v62 = vld [vmem:[%s2546_s17 + $0x10] ss:$28 sps:$4 sm:$0xff]   ;;  %v2159_v63 = vld [vmem:[%s2546_s17 + $0x18] ss:$28 sps:$4 sm:$0xff]   ;;  %s2651_s17 = sand.u32 1, %s2332_s10  }
  0x32   : > { %1891 = vmatpush3.bf16.msra.mxu0 %v2116_v22  ;;  %v2162_v1 = vld [vmem:[%s2951_s2 + $0x4] ss:$12 sps:$4 sm:$0xff]   ;;  %s1759_s27 = sshll.u32 %s2651_s17, 4 }
  0x33   : > { %1913 = vmatpush3.bf16.msra.mxu1 %v2117_v23  ;;  %1892 = vmatprep.subr.bf16.mxu0 %v2118_v24  ;;  %s2654_s28 = scalar_lea.vmem [#allocation2], %s1759_s27  ;;  %s1524_s27 = scalar_lea.sflag [#allocation3], %s2651_s17 }
  0x34   : > { %1914 = vmatprep.subr.bf16.mxu1 %v2119_v25  ;;  %s1552_s26 = sshll.u32 %s2654_s28, 4  ;;  %s2730_s26 = int_to_ptr.vmem [resolvable:$true] %s1552_s26 }
  0x35   : > { %s2186_s21 = scalar_lea.vmem %s2730_s26, 256  ;;  %p2193_p0 = scmp.lt.s32.totalorder %s2730_s26, %s2191_s22 }
  0x36   : > { %1893 = vmatpush3.bf16.msra.mxu0 %v2120_v26  ;;  %p2187_p11 = scmp.ne.s32.totalorder %s2730_s26, %s2186_s21  ;;  %p2194_p1 = scmp.lt.s32.totalorder %s2192_s14, %s2186_s21 }
  0x37   : > { %1915 = vmatpush3.bf16.msra.mxu1 %v2121_v27  ;;  %1894 = vmatprep.subr.bf16.mxu0 %v2122_v28 }
  0x38   : > { %1916 = vmatprep.subr.bf16.mxu1 %v2123_v29  ;;  %p2188_p12 = pnand %p2187_p11, %p2441_p5  ;;  %p2195_p2 = por %p2194_p1, %p2193_p0 }
  0x3a   : > { %1895 = vmatpush3.bf16.msra.mxu0 %v2124_v30  ;;  %p2189_p13 = pneg %p2188_p12 }
  0x3b   : > { %1917 = vmatpush3.bf16.msra.mxu1 %v2125_v31  ;;  %1924 = vmatprep.subr.bf16.mxu0 %v2132_v37 }
  0x3c   : > { %1974 = vmatprep.subr.bf16.mxu1 %v2342_v36  ;;  %p2196_p3 = pnand %p2195_p2, %p2189_p13 }
  0x3d   : > { %885 = vmatmul.mubr.bf16.vlgmr.msra.gmra.mrb[0].mxu0 %v2126_v32 }
  0x3e   : > { %926 = vmatmul.mubr.bf16.vlgmr.msra.gmra.mrb[0].mxu1 %v2129_v34  ;;  %1925 = vmatpush3.bf16.msra.mxu0 %v2133_v38 }
  0x3f   : > { %1990 = vmatprep.mubr.msk.bf16.mxu1 %vm2343_vm0, %v2342_v36  ;;  %1975 = vmatpush3.bf16.msra.mxu1 %v2134_v39 }
  0x40   : > { %1926 = vmatprep.subr.bf16.mxu0 %v2135_v40  ;;  %1976 = vmatprep.subr.bf16.mxu1 %v2342_v36  ;;  %v2163_v40 = vld [vmem:[%s2951_s2 + $0x8] ss:$12 sps:$4 sm:$0xff]  }
  0x41   : > { %966 = vmatprep.mubr.bf16.mxu0 %v2157_v58  ;;  %v2167_v58 = vld [vmem:[%s2934_s5 + $0x8] sm:$0xff]  }
  0x42   : > { %1927 = vmatpush3.bf16.msra.mxu0 %v2136_v41 }
  0x43   : > { %1977 = vmatpush3.bf16.msra.mxu1 %v2137_v42  ;;  %1928 = vmatprep.subr.bf16.mxu0 %v2138_v43  ;;  %v2164_v42 = vld [vmem:[%s2932_s3] sm:$0xff]  }
  0x44   : > { %1978 = vmatprep.subr.bf16.mxu1 %v2342_v36  ;;  %v2170_v43 = vld [vmem:[%s2933_s4] sm:$0xff]  }
  0x46   : > { %1929 = vmatpush3.bf16.msra.mxu0 %v2139_v44 }
  0x47   : > { %1979 = vmatpush3.bf16.msra.mxu1 %v2140_v45  ;;  %1930 = vmatprep.subr.bf16.mxu0 %v2141_v46 }
  0x48   : > { %1980 = vmatprep.subr.bf16.mxu1 %v2342_v36 }
  0x4a   : > { %1931 = vmatpush3.bf16.msra.mxu0 %v2142_v47 }
  0x4b   : > { %1981 = vmatpush3.bf16.msra.mxu1 %v2143_v48  ;;  %1932 = vmatprep.subr.bf16.mxu0 %v2144_v49  ;;  %v2165_v49 = vld [vmem:[%s2932_s3 + $0x8] sm:$0xff]  }
  0x4c   : > { %1982 = vmatprep.subr.bf16.mxu1 %v2342_v36 }
  0x4e   : > { %1933 = vmatpush3.bf16.msra.mxu0 %v2145_v50  ;;  %v2166_v50 = vld [vmem:[%s2934_s5] sm:$0xff]  }
  0x4f   : > { %1983 = vmatpush3.bf16.msra.mxu1 %v2146_v51  ;;  %1934 = vmatprep.subr.bf16.mxu0 %v2147_v52  ;;  %v2172_v51 = vld [vmem:[%s2933_s4 + $0x8] sm:$0xff]   ;;  %v2174_v52 = vld [vmem:[%s2933_s4 + $0x10] sm:$0xff]  }
  0x50   : > { %1984 = vmatprep.subr.bf16.mxu1 %v2342_v36 }
  0x52   : > { %1935 = vmatpush3.bf16.msra.mxu0 %v2148_v53 }
  0x53   : > { %1985 = vmatpush3.bf16.msra.mxu1 %v2149_v54  ;;  %1936 = vmatprep.subr.bf16.mxu0 %v2150_v55 }
  0x54   : > { %1986 = vmatprep.subr.bf16.mxu1 %v2342_v36 }
  0x56   : > { %1937 = vmatpush3.bf16.msra.mxu0 %v2151_v56 }
  0x57   : > { %1987 = vmatpush3.bf16.msra.mxu1 %v2152_v57  ;;  %1938 = vmatprep.subr.bf16.mxu0 %v2153_v59  ;;  %v2168_v59 = vld [vmem:[%s2934_s5 + $0x10] sm:$0xff]  }
  0x58   : > { %1988 = vmatprep.subr.bf16.mxu1 %v2342_v36 }
  0x5a   : > { %1939 = vmatpush3.bf16.msra.mxu0 %v2154_v60  ;;  %v2176_v60 = vld [vmem:[%s2933_s4 + $0x18] sm:$0xff]  }
  0x5b   : > { %1989 = vmatpush3.bf16.msra.mxu1 %v2158_v61  ;;  %v2169_v61 = vld [vmem:[%s2934_s5 + $0x18] sm:$0xff]  }
  0x5c   : > { %1055 = vmatprep.subr.bf16.mxu1 %v2162_v1  ;;  %v2177_v1 = vld [vmem:[%s2934_s5 + $0x38] sm:$0xff]  }
  0x5d   : > { %967 = vmatmul.mubr.bf16.vlgmr.msra.gmra.mrb[4].mxu0 %v2155_v62  ;;  %v2171_v62 = vld [vmem:[%s2934_s5 + $0x20] sm:$0xff]  }
  0x5e   : > { %1991 = vmatmul.mubr.bf16.vlgmr.msra.gmra.mrb[4].mxu1 %v2159_v63  ;;  %2002 = vmatprep.mubr.msk.bf16.mxu0 %vm1028_vm1, %v2164_v42  ;;  %v2173_v63 = vld [vmem:[%s2934_s5 + $0x28] sm:$0xff]  }
  0x5f   : > { %1087 = vmatprep.mubr.bf16.mxu1 %v2344_v2  ;;  %1056 = vmatpush1.bf16.msra.mxu1 %v2160_v0  ;;  %v2175_v0 = vld [vmem:[%s2934_s5 + $0x30] sm:$0xff]  }
  0x60   : > { %1994 = vmatprep.subr.bf16.mxu1 %v2342_v36 }
 0x110   : > { %v1896_v3 = vpop.f32.mrb[0].mxu0 }
 0x111   : > { %v1918_v4 = vpop.f32.mrb[0].mxu1  ;;  %v1897_v5 = vpop.f32.mrb[1].mxu0 }
 0x112   : > { %v1898_v6 = vadd.f32 %v1897_v5, %v1896_v3  ;;  %v1919_v7 = vpop.f32.mrb[1].mxu1  ;;  %v1899_v8 = vpop.f32.mrb[2].mxu0 }
 0x113   : > { %v1920_v9 = vadd.f32 %v1919_v7, %v1918_v4  ;;  %v1921_v10 = vpop.f32.mrb[2].mxu1  ;;  %v1900_v11 = vpop.f32.mrb[3].mxu0 }
 0x114   : > { %v1901_v12 = vadd.f32 %v1900_v11, %v1899_v8  ;;  %v1922_v13 = vpop.f32.mrb[3].mxu1 }
 0x115   : > { %v928_v14 = vadd.f32 %v1920_v9, %v1898_v6  ;;  %v1923_v15 = vadd.f32 %v1922_v13, %v1921_v10 }
 0x117   : > { %v931_v16 = vadd.f32 %v1923_v15, %v1901_v12 }
 0x130   : > { %v1940_v17 = vpop.f32.mrb[4].mxu0 }
 0x131   : > { %v1941_v18 = vpop.f32.mrb[5].mxu0  ;;  %v1009_v19 = vpop.f32.mrb[4].mxu1 }
 0x132   : > { %v1942_v20 = vadd.f32 %v1941_v18, %v1940_v17  ;;  %v1943_v21 = vpop.f32.mrb[6].mxu0  ;;  %v1992_v22 = vpop.f32.mrb[5].mxu1 }
 0x133   : > { %v1944_v23 = vpop.f32.mrb[7].mxu0  ;;  %v1012_v24 = vpop.f32.mrb[6].mxu1 }
 0x134   : > { %v969_v25 = vadd.f32 %v1942_v20, %v928_v14  ;;  %v1945_v26 = vadd.f32 %v1944_v23, %v1943_v21  ;;  %v1993_v27 = vpop.f32.mrb[7].mxu1 }
 0x136   : > { %v1010_v28 = vadd.f32 %v1009_v19, %v969_v25  ;;  %v972_v29 = vadd.f32 %v1945_v26, %v931_v16 }
 0x138   : > { %v1827_v30 = vmul.f32 -1.442695, %v1010_v28  ;;  %v1013_v31 = vadd.f32 %v1012_v24, %v972_v29 }
 0x13a   : > { %2178 = vpow2.f32 %v1827_v30  ;;  %v1828_v32 = vmul.f32 -1.442695, %v1013_v31 }
 0x13c   : > { %2180 = vpow2.f32 %v1828_v32 }
 0x144   : > { %v2179_v33 = vpop.eup %2178 }
 0x145   : > { %v1022_v34 = vadd.f32 1.0, %v2179_v33 }
 0x146   : > { %v2181_v35 = vpop.eup %2180 }
 0x147   : > { %2182 = vrcp.f32 %v1022_v34  ;;  %v1023_v37 = vadd.f32 1.0, %v2181_v35 }
 0x149   : > { %2184 = vrcp.f32 %v1023_v37 }
 0x151   : > { %v2183_v38 = vpop.eup %2182 }
 0x152   : > { %1029 = vst.msk [vmem:[%s2654_s28] sm:$0xff] %vm1028_vm1, %v2183_v38 }
 0x153   : > { %v2185_v39 = vpop.eup %2184 }
 0x154   : > { %v1031_v41 = vpack.c.bf16 %v2185_v39, %v2183_v38  ;;  %1030 = vst.msk [vmem:[%s2654_s28 + $0x8] sm:$0xff] %vm1028_vm1, %v2185_v39 }
 0x156   : > { %1832 = vmatmul.mubr.msk.bf16.vlgmr.msra.gmra.mrb[8].mxu1 %vm1028_vm1, %v1031_v41 }
 0x157   : > { %1995 = vmatpush3.bf16.msra.mxu1 %v2163_v40  ;;  %1996 = vmatprep.mubr.msk.bf16.mxu1 %vm2343_vm0, %v2342_v36 }
 0x15e   : > { %1997 = vmatmul.mubr.msk.bf16.vlgmr.msra.gmra.mrb[12].mxu1 %vm1028_vm1, %v1031_v41 }
 0x15f   : > { %2008 = vmatprep.mubr.msk.bf16.mxu1 %vm1028_vm1, %v2170_v43 }
 0x229   : > { %v1089_v44 = vpop.f32.mrb[8].mxu1 }
 0x22a   : > { %v1091_v45 = vpop.f32.mrb[9].mxu1 }
 0x22b   : > { %v1093_v46 = vpop.f32.mrb[10].mxu1 }
 0x22c   : > { %v1139_v47 = vpack.c.bf16 %v1093_v46, %v1089_v44  ;;  %v1095_v48 = vpop.f32.mrb[11].mxu1 }
 0x22d   : > { %v1214_v36 = vpack.c.bf16 %v1095_v48, %v1091_v45 }
 0x22e   : > { %2000 = vmatprep.subr.bf16.mxu0 %v1139_v47 }
 0x22f   : > { %2001 = vmatpush3.bf16.msra.mxu0 %v1139_v47  ;;  %2006 = vmatprep.subr.bf16.mxu1 %v1214_v36 }
 0x230   : > { %2007 = vmatpush3.bf16.msra.mxu1 %v1214_v36 }
 0x231   : > { %v1132_v53 = vpop.f32.mrb[12].mxu1 }
 0x232   : > { %v1998_v54 = vpop.f32.mrb[13].mxu1  ;;  %2003 = vmatmul.mubr.msk.bf16.vlgmr.msra.gmra.mrb[8].mxu0 %vm1028_vm1, %v2165_v49 }
 0x233   : > { %v1135_v55 = vpop.f32.mrb[14].mxu1  ;;  %2018 = vmatprep.mubr.msk.bf16.mxu0 %vm1028_vm1, %v2166_v50  ;;  %2009 = vmatmul.mubr.msk.bf16.vlgmr.msra.gmra.mrb[16].mxu1 %vm1028_vm1, %v2172_v51 }
 0x234   : > { %v1329_v56 = vpack.c.bf16 %v1135_v55, %v1132_v53  ;;  %v1999_v57 = vpop.f32.mrb[15].mxu1  ;;  %2012 = vmatprep.mubr.msk.bf16.mxu1 %vm1028_vm1, %v2174_v52 }
 0x236   : > { %2016 = vmatprep.subr.bf16.mxu0 %v1329_v56 }
 0x237   : > { %2017 = vmatpush3.bf16.msra.mxu0 %v1329_v56 }
 0x23a   : > { %2019 = vmatmul.mubr.msk.bf16.vlgmr.msra.gmra.mrb[12].mxu0 %vm1028_vm1, %v2167_v58 }
 0x23b   : > { %2022 = vmatprep.mubr.msk.bf16.mxu0 %vm1028_vm1, %v2168_v59  ;;  %2013 = vmatmul.mubr.msk.bf16.gmra.mrb[20].mxu1 %vm1028_vm1, %v2176_v60 }
 0x242   : > { %2023 = vmatmul.mubr.msk.bf16.gmra.mrb[16].mxu0 %vm1028_vm1, %v2169_v61 }
 0x243   : > { %2026 = vmatprep.mubr.msk.bf16.mxu0 %vm1028_vm1, %v2171_v62 }
 0x24a   : > { %2027 = vmatmul.mubr.msk.bf16.gmra.mrb[20].mxu0 %vm1028_vm1, %v2173_v63 }
 0x24b   : > { %2030 = vmatprep.mubr.msk.bf16.mxu0 %vm1028_vm1, %v2175_v0 }
 0x252   : > { %2031 = vmatmul.mubr.msk.bf16.gmra.mrb[24].mxu0 %vm1028_vm1, %v2177_v1 }
 0x253   : > { %2199 = shalt.err (!%p2196_p3)
}
 0x254   : > { %s2200_s28 = scalar_lea.hbm %s2727_s16, 256  ;;  %s2204_s25 = scalar_lea.hbm %s2935_s6, 512 }
 0x255   : > { %p2201_p4 = scmp.ne.s32.totalorder %s2727_s16, %s2200_s28  ;;  %p2205_p9 = scmp.lt.u32.totalorder %s2727_s16, %s2935_s6 }
 0x256   : > { %p2206_p10 = scmp.lt.u32.totalorder %s2204_s25, %s2200_s28  ;;  %p2208_p12 = scmp.lt.u32.totalorder %s2200_s28, %s2727_s16 }
 0x257   : > { %p2202_p7 = pnand %p2201_p4, %p2441_p5 }
 0x258   : > { %p2207_p11 = por %p2206_p10, %p2205_p9 }
 0x259   : > { %p2203_p8 = pneg %p2202_p7 }
 0x25a   : > { %p2209_p13 = por %p2208_p12, %p2207_p11 }
 0x25c   : > { %p2210_p0 = pnand %p2209_p13, %p2203_p8 }
 0x25e   : > { %2213 = shalt.err (!%p2210_p0)
}
 0x25f   : > { %s2940_s14 = smov 128   ;;  %s2942_s21 = smov 8   ;;  %vm1209_vm2 = vcmask 261120   ;;  %vm1320_vm3 = vcmask 523264  }
 0x260   : > { %2035 = dma.vmem_to_hbm [thread:$0]  (%p2441_p5), %s2730_s26, 256, %s2727_s16, %s1524_s27, %s2940_s14, %s2940_s14, %s2942_s21  }
 0x261   : > { %s1760_s28 = sshll.u32 %s2651_s17, 5  ;;  %s1761_s23 = sshll.u32 %s2651_s17, 6 }
 0x262   : > { %s339_s24 = scalar_lea.vmem [#allocation4], %s1760_s28  ;;  %s1528_s29 = sand.u32 1, %s2422_s13  }
 0x263   : > { %s1568_s25 = sshll.u32 %s339_s24, 4  ;;  %s1877_s22 = sshll.u32 %s2422_s13, 9  ;;  %s2764_s25 = int_to_ptr.vmem [resolvable:$true] %s1568_s25 }
 0x264   : > { %s2767_s16 = scalar_lea.vmem [#allocation6], %s1761_s23  ;;  %s2774_s28 = scalar_lea.hbm %s2936_s7, %s1877_s22 }
 0x265   : > { %s2785_s23 = scalar_lea.sflag [#allocation5], %s1528_s29  ;;  %s2214_s26 = scalar_lea.vmem %s2764_s25, 512 }
 0x266   : > { %p2215_p1 = scmp.ne.s32.totalorder %s2764_s25, %s2214_s26  ;;  %s2348_s22 = smov [#allocation4]  }
 0x267   : > { %s2218_s27 = sshll.u32 %s2348_s22, 4  ;;  %s2219_s27 = int_to_ptr.vmem [resolvable:$false] %s2218_s27 }
 0x268   : > { %p2216_p2 = pnand %p2215_p1, %p2441_p5  ;;  %s2220_s14 = scalar_lea.vmem %s2219_s27, 1024 }
 0x269   : > { %p2221_p4 = scmp.lt.s32.totalorder %s2764_s25, %s2219_s27  ;;  %p2222_p7 = scmp.lt.s32.totalorder %s2220_s14, %s2214_s26 }
 0x26a   : > { %p2217_p3 = pneg %p2216_p2 }
 0x26b   : > { %p2223_p8 = por %p2222_p7, %p2221_p4 }
 0x26d   : > { %p2224_p9 = pnand %p2223_p8, %p2217_p3 }
 0x305   : > { %v2004_v2 = vpop.f32.mrb[8].mxu0 }
 0x306   : > { %1212 = vst.msk [vmem:[%s339_s24 + $0x10] sm:$0xff] %vm1209_vm2, %v2004_v2  ;;  %v1194_v3 = vpop.f32.mrb[9].mxu0  ;;  %v2010_v4 = vpop.f32.mrb[16].mxu1 }
 0x307   : > { %1210 = vst.msk [vmem:[%s339_s24] sm:$0xff] %vm1209_vm2, %v1194_v3  ;;  %v2005_v5 = vpop.f32.mrb[10].mxu0  ;;  %v1289_v6 = vpop.f32.mrb[17].mxu1 }
 0x308   : > { %1323 = vst.msk [vmem:[%s2767_s16 + $0x10] sm:$0xff] %vm1320_vm3, %v2010_v4  ;;  %v1197_v7 = vpop.f32.mrb[11].mxu0  ;;  %1321 = vst.msk [vmem:[%s2767_s16] sm:$0xff] %vm1320_vm3, %v1289_v6  ;;  %v2011_v8 = vpop.f32.mrb[18].mxu1 }
 0x309   : > { %1213 = vst.msk [vmem:[%s339_s24 + $0x18] sm:$0xff] %vm1209_vm2, %v2005_v5  ;;  %1211 = vst.msk [vmem:[%s339_s24 + $0x8] sm:$0xff] %vm1209_vm2, %v1197_v7  ;;  %v1292_v9 = vpop.f32.mrb[19].mxu1 }
 0x30a   : > { %1324 = vst.msk [vmem:[%s2767_s16 + $0x18] sm:$0xff] %vm1320_vm3, %v2011_v8  ;;  %1322 = vst.msk [vmem:[%s2767_s16 + $0x8] sm:$0xff] %vm1320_vm3, %v1292_v9 }
 0x30b   : > { %2227 = shalt.err (!%p2224_p9)
}
 0x30c   : > { %s2228_s24 = scalar_lea.hbm %s2774_s28, 512  ;;  %s2232_s22 = scalar_lea.hbm %s2936_s7, 1024 }
 0x30d   : > { %p2229_p10 = scmp.ne.s32.totalorder %s2774_s28, %s2228_s24  ;;  %p2233_p13 = scmp.lt.u32.totalorder %s2774_s28, %s2936_s7 }
 0x30e   : > { %p2234_p0 = scmp.lt.u32.totalorder %s2232_s22, %s2228_s24  ;;  %p2236_p2 = scmp.lt.u32.totalorder %s2228_s24, %s2774_s28 }
 0x30f   : > { %p2230_p11 = pnand %p2229_p10, %p2441_p5 }
 0x310   : > { %p2235_p1 = por %p2234_p0, %p2233_p13 }
 0x311   : > { %p2231_p12 = pneg %p2230_p11 }
 0x312   : > { %p2237_p3 = por %p2236_p2, %p2235_p1 }
 0x314   : > { %p2238_p4 = pnand %p2237_p3, %p2231_p12 }
 0x316   : > { %2241 = shalt.err (!%p2238_p4)
}
 0x317   : > { %s2952_s14 = smov 8   ;;  %s2953_s26 = smov 128   ;;  %v2020_v10 = vpop.f32.mrb[12].mxu0  ;;  %v2014_v12 = vpop.f32.mrb[20].mxu1 }
 0x318   : > { %2036 = dma.vmem_to_hbm [thread:$0]  (%p2441_p5), %s2764_s25, 512, %s2774_s28, %s2785_s23, %s2953_s26, %s2953_s26, %s2952_s14   ;;  %v1444_v11 = vpop.f32.mrb[13].mxu0  ;;  %v1305_v14 = vpop.f32.mrb[21].mxu1 }
 0x319   : > { %s1584_s0 = sshll.u32 %s2767_s16, 4  ;;  %s1878_s21 = sshll.u32 %s2422_s13, 10  ;;  %v2021_v13 = vpop.f32.mrb[14].mxu0  ;;  %1327 = vst.msk [vmem:[%s2767_s16 + $0x30] sm:$0xff] %vm1320_vm3, %v2014_v12  ;;  %1325 = vst.msk [vmem:[%s2767_s16 + $0x20] sm:$0xff] %vm1320_vm3, %v1305_v14  ;;  %v2015_v16 = vpop.f32.mrb[22].mxu1  ;;  %s2823_s0 = int_to_ptr.vmem [resolvable:$true] %s1584_s0 }
 0x31a   : > { %s2954_s24 = sshll.u32 %s2651_s17, 7  ;;  %v1447_v15 = vpop.f32.mrb[15].mxu0  ;;  %s2830_s22 = scalar_lea.hbm %s2937_s8, %s1878_s21  ;;  %1328 = vst.msk [vmem:[%s2767_s16 + $0x38] sm:$0xff] %vm1320_vm3, %v2015_v16  ;;  %v1308_v17 = vpop.f32.mrb[23].mxu1 }
 0x31b   : > { %s2816_s29 = scalar_lea.vmem [#allocation7], %s2954_s24  ;;  %1326 = vst.msk [vmem:[%s2767_s16 + $0x28] sm:$0xff] %vm1320_vm3, %v1308_v17  ;;  %s2242_s27 = scalar_lea.vmem %s2823_s0, 1024 }
 0x31c   : > { %1509 = vst [vmem:[%s2816_s29 + $0x10] sm:$0xff] %v2020_v10  ;;  %1507 = vst [vmem:[%s2816_s29] sm:$0xff] %v1444_v11  ;;  %p2243_p7 = scmp.ne.s32.totalorder %s2823_s0, %s2242_s27  ;;  %s2349_s24 = smov [#allocation6]  }
 0x31d   : > { %1510 = vst [vmem:[%s2816_s29 + $0x18] sm:$0xff] %v2021_v13  ;;  %1508 = vst [vmem:[%s2816_s29 + $0x8] sm:$0xff] %v1447_v15  ;;  %s2246_s1 = sshll.u32 %s2349_s24, 4  ;;  %s2247_s1 = int_to_ptr.vmem [resolvable:$false] %s2246_s1 }
 0x31e   : > { %p2244_p8 = pnand %p2243_p7, %p2441_p5  ;;  %s2248_s2 = scalar_lea.vmem %s2247_s1, 2048 }
 0x31f   : > { %p2249_p10 = scmp.lt.s32.totalorder %s2823_s0, %s2247_s1  ;;  %p2250_p11 = scmp.lt.s32.totalorder %s2248_s2, %s2242_s27 }
 0x320   : > { %p2245_p9 = pneg %p2244_p8 }
 0x321   : > { %p2251_p12 = por %p2250_p11, %p2249_p10 }
 0x323   : > { %p2252_p13 = pnand %p2251_p12, %p2245_p9 }
 0x325   : > { %2255 = shalt.err (!%p2252_p13)
}
 0x326   : > { %s2256_s16 = scalar_lea.hbm %s2830_s22, 1024  ;;  %s2260_s28 = scalar_lea.hbm %s2937_s8, 2048 }
 0x327   : > { %p2257_p0 = scmp.ne.s32.totalorder %s2830_s22, %s2256_s16  ;;  %p2261_p3 = scmp.lt.u32.totalorder %s2830_s22, %s2937_s8 }
 0x328   : > { %p2262_p4 = scmp.lt.u32.totalorder %s2260_s28, %s2256_s16  ;;  %p2264_p8 = scmp.lt.u32.totalorder %s2256_s16, %s2830_s22 }
 0x329   : > { %p2258_p1 = pnand %p2257_p0, %p2441_p5 }
 0x32a   : > { %p2263_p7 = por %p2262_p4, %p2261_p3 }
 0x32b   : > { %p2259_p2 = pneg %p2258_p1 }
 0x32c   : > { %p2265_p9 = por %p2264_p8, %p2263_p7 }
 0x32e   : > { %p2266_p10 = pnand %p2265_p9, %p2259_p2 }
 0x330   : > { %2269 = shalt.err (!%p2266_p10)
}
 0x331   : > { %2037 = dma.vmem_to_hbm [thread:$0]  (%p2441_p5), %s2823_s0, 1024, %s2830_s22, %s2785_s23, %s2953_s26, %s2953_s26, %s2952_s14   ;;  %v2024_v18 = vpop.f32.mrb[16].mxu0 }
 0x332   : > { %1513 = vst [vmem:[%s2816_s29 + $0x30] sm:$0xff] %v2024_v18  ;;  %v1460_v19 = vpop.f32.mrb[17].mxu0  ;;  %s1879_s2 = sshll.u32 %s2422_s13, 11  ;;  %s1600_s23 = sshll.u32 %s2816_s29, 4  ;;  %s2879_s23 = int_to_ptr.vmem [resolvable:$true] %s1600_s23 }
 0x333   : > { %1511 = vst [vmem:[%s2816_s29 + $0x20] sm:$0xff] %v1460_v19  ;;  %v2025_v20 = vpop.f32.mrb[18].mxu0  ;;  %s2877_s27 = scalar_lea.hbm %s2938_s9, %s1879_s2  ;;  %s1539_s13 = scalar_lea.sflag [#allocation8], %s2651_s17 }
 0x334   : > { %1514 = vst [vmem:[%s2816_s29 + $0x38] sm:$0xff] %v2025_v20  ;;  %v1463_v21 = vpop.f32.mrb[19].mxu0  ;;  %s2270_s16 = scalar_lea.vmem %s2879_s23, 2048  ;;  %s2350_s21 = smov [#allocation7]  }
 0x335   : > { %1512 = vst [vmem:[%s2816_s29 + $0x28] sm:$0xff] %v1463_v21  ;;  %v2028_v22 = vpop.f32.mrb[20].mxu0  ;;  %p2271_p11 = scmp.ne.s32.totalorder %s2879_s23, %s2270_s16  ;;  %s2274_s25 = sshll.u32 %s2350_s21, 4  ;;  %s2275_s25 = int_to_ptr.vmem [resolvable:$false] %s2274_s25 }
 0x336   : > { %1517 = vst [vmem:[%s2816_s29 + $0x50] sm:$0xff] %v2028_v22  ;;  %v1476_v23 = vpop.f32.mrb[21].mxu0  ;;  %s2276_s28 = scalar_lea.vmem %s2275_s25, 4096  ;;  %p2277_p0 = scmp.lt.s32.totalorder %s2879_s23, %s2275_s25 }
 0x337   : > { %1515 = vst [vmem:[%s2816_s29 + $0x40] sm:$0xff] %v1476_v23  ;;  %v2029_v24 = vpop.f32.mrb[22].mxu0  ;;  %p2272_p12 = pnand %p2271_p11, %p2441_p5  ;;  %p2278_p1 = scmp.lt.s32.totalorder %s2276_s28, %s2270_s16 }
 0x338   : > { %1518 = vst [vmem:[%s2816_s29 + $0x58] sm:$0xff] %v2029_v24  ;;  %v1479_v25 = vpop.f32.mrb[23].mxu0 }
 0x339   : > { %1516 = vst [vmem:[%s2816_s29 + $0x48] sm:$0xff] %v1479_v25  ;;  %v2032_v26 = vpop.f32.mrb[24].mxu0  ;;  %p2273_p13 = pneg %p2272_p12  ;;  %p2279_p2 = por %p2278_p1, %p2277_p0 }
 0x33a   : > { %1521 = vst [vmem:[%s2816_s29 + $0x70] sm:$0xff] %v2032_v26  ;;  %v1492_v27 = vpop.f32.mrb[25].mxu0 }
 0x33b   : > { %1519 = vst [vmem:[%s2816_s29 + $0x60] sm:$0xff] %v1492_v27  ;;  %v2033_v28 = vpop.f32.mrb[26].mxu0  ;;  %p2280_p3 = pnand %p2279_p2, %p2273_p13 }
 0x33c   : > { %1522 = vst [vmem:[%s2816_s29 + $0x78] sm:$0xff] %v2033_v28  ;;  %v1495_v29 = vpop.f32.mrb[27].mxu0 }
 0x33d   : > { %1520 = vst [vmem:[%s2816_s29 + $0x68] sm:$0xff] %v1495_v29 }
 0x33e   : > { %2283 = shalt.err (!%p2280_p3)
}
 0x33f   : > { %s2284_s29 = scalar_lea.hbm %s2877_s27, 2048  ;;  %s2288_s2 = scalar_lea.hbm %s2938_s9, 4096 }
 0x340   : > { %p2285_p4 = scmp.ne.s32.totalorder %s2877_s27, %s2284_s29  ;;  %p2289_p9 = scmp.lt.u32.totalorder %s2877_s27, %s2938_s9 }
 0x341   : > { %p2290_p10 = scmp.lt.u32.totalorder %s2288_s2, %s2284_s29  ;;  %p2292_p12 = scmp.lt.u32.totalorder %s2284_s29, %s2877_s27 }
 0x342   : > { %p2286_p7 = pnand %p2285_p4, %p2441_p5 }
 0x343   : > { %p2291_p11 = por %p2290_p10, %p2289_p9 }
 0x344   : > { %p2287_p8 = pneg %p2286_p7 }
 0x345   : > { %p2293_p13 = por %p2292_p12, %p2291_p11 }
 0x347   : > { %p2294_p0 = pnand %p2293_p13, %p2287_p8 }
 0x349   : > { %2297 = shalt.err (!%p2294_p0)
}
 0x34a   : > { %2038 = dma.vmem_to_hbm [thread:$0]  (%p2441_p5), %s2879_s23, 2048, %s2877_s27, %s1539_s13, %s2953_s26, %s2953_s26, %s2952_s14  }
 0x34b PF: > { %p2056_p1 = scmp.ge.s32.totalorder %s2340_s12, 2  ;;  %s1615_s16 = sand.u32 1, %s2328_s30  }
 0x34c   : > { %s1616_s21 = scalar_lea.sflag [#allocation3], %s1615_s16 }
 0x34d   : > { %p2044_p2 = pnand %p2056_p1, %p2445_p6 }
 0x34f   : > { %2315 = dma.done.wait (!%p2044_p2), %s1616_s21, 256  }
 0x350   : > { %2317 = vsyncadd (!%p2044_p2), %s1616_s21, 4294967040  ;;  %s2955_s19 = sadd.s32 4294967294, %s2340_s12  }
 0x351   : > { %s1624_s25 = sand.u32 1, %s2955_s19  }
 0x352   : > { %s1625_s28 = scalar_lea.sflag [#allocation5], %s1624_s25 }
 0x353   : > { %2319 = dma.done.wait (!%p2044_p2), %s1625_s28, 1536  }
 0x354   : > { %2321 = vsyncadd (!%p2044_p2), %s1625_s28, 4294965760  ;;  %s1643_s17 = scalar_lea.sflag [#allocation8], %s1615_s16 }
 0x355   : > { %2323 = dma.done.wait (!%p2044_p2), %s1643_s17, 2048  }
 0x356   : > { %2325 = vsyncadd (!%p2044_p2), %s1643_s17, 4294965248  ;;  %p26_p5 = scmp.ge.s32.totalorder %s2426_s15, 4   ;;  %s2956_s30 = smov %s2332_s10 }
 0x357   : > { %s2957_s10 = smov %s2336_s11  ;;  %s2958_s11 = smov %s2439_s18 }
 0x358   : > { %s2959_s12 = smov %s2426_s15  ;;  %28 = sbr.rel (!%p26_p5) target bundleno = 11 (0xb), region = 128 }
 0x35f   :  { %1648 = vsyncpa [#allocation3], 1 }
 0x360   :  { %1650 = vsyncpa [#allocation3 + $0x1], 1 }
 0x361   :  { %1651 = vsyncpa [#allocation5], 1 }
 0x362   :  { %1653 = vsyncpa [#allocation5 + $0x1], 1 }
 0x363   :  { %1654 = vsyncpa [#allocation8], 1 }
 0x364   :  { %1656 = vsyncpa [#allocation8 + $0x1], 1 }

</bundles_post_ra>
